<compile_context>
chip_gen: v5e
topology: v5e:2x2
jax: 0.10.0
libtpu: 0.0.40
codegen_flags: <defaults>
</compile_context>

<pallas_src>
import functools

import jax
import jax.numpy as jnp
from jax import lax
from jax.experimental import pallas as pl
from jax.experimental.pallas import tpu as pltpu

_LANE = 128
_SUBLANE = 8
_CHUNK_ROWS = 512                      # (512, 128) f32 temporaries = 256 KiB
_DEF_BLOCK_BYTES = 4 * 1024 * 1024     # per-input block -> 16 MiB pipeline footprint


def _rmse_kernel(pred_ref, target_ref, out_ref, *,
                 rows: int, tile_rows: int, chunk_rows: int,
                 steps_per_split: int, needs_mask: bool):
    """One grid step: out_ref[(8,128)] += sum-of-squares of a (tile_rows,128) tile.

    Grid = (splits, steps): axis 0 is "parallel" (one TC each on v7x), axis 1 is
    the "arbitrary" reduction axis.  The (8,128) output block is resident across
    axis 1 (index map ignores it), so it acts as the per-split accumulator.
    """
    c = pl.program_id(0)               # split index (parallel)
    i = pl.program_id(1)               # reduction step within the split

    @pl.when(i == 0)
    def _():
        out_ref[...] = jnp.zeros_like(out_ref)

    n_full = tile_rows // chunk_rows
    tail_rows = tile_rows - n_full * chunk_rows

    if needs_mask:
        # Logical first row of this tile; may exceed `rows` for clamped /
        # partial boundary tiles, in which case everything is masked to 0.
        base_row = (c * steps_per_split + i) * tile_rows

    def ssq_chunk(r0, nrows):
        d = (pred_ref[pl.ds(r0, nrows), :].astype(jnp.float32)
             - target_ref[pl.ds(r0, nrows), :].astype(jnp.float32))
        sq = d * d
        if needs_mask:
            rid = lax.broadcasted_iota(jnp.int32, (nrows, _LANE), 0) + (base_row + r0)
            sq = jnp.where(rid < rows, sq, 0.0)
        # Pure VPU reduction onto a single vreg-shaped partial.
        return sq.reshape(nrows // _SUBLANE, _SUBLANE, _LANE).sum(axis=0)

    def body(n, acc8):
        r0 = pl.multiple_of(n * chunk_rows, chunk_rows)
        return acc8 + ssq_chunk(r0, chunk_rows)

    acc8 = lax.fori_loop(0, n_full, body,
                         jnp.zeros((_SUBLANE, _LANE), jnp.float32))
    if tail_rows:                      # static; only in the single-tile path
        acc8 = acc8 + ssq_chunk(n_full * chunk_rows, tail_rows)

    out_ref[...] += acc8


def rmse_loss(pred, target, raw=None, col_names=None, *,
              block_bytes: int = _DEF_BLOCK_BYTES, num_splits: int = 2):
    """JAX wrapper mirroring RMSE.forward (raw / col_names are unused)."""
    del raw, col_names
    assert pred.shape == target.shape, (pred.shape, target.shape)
    total = int(pred.size)
    if total == 0:                     # torch.mean of empty -> nan
        return jnp.array(jnp.nan, dtype=jnp.float32)

    pred_flat = pred.reshape(-1)
    target_flat = target.reshape(-1)

    # Lane-dense (rows, 128) layout with rows a multiple of 8 (sublane-dense).
    row_block = _SUBLANE * _LANE       # 1024 elements
    rem = total % row_block
    if rem:
        # TODO(synk): a fully pad-free ragged path (1-D blocks / manual DMA)
        # would avoid this extra HBM copy; here we pad <= 1023 zeros so both
        # inputs reshape cleanly (identical zero pad -> diff == 0).
        pad = row_block - rem
        pred_flat = jnp.pad(pred_flat, (0, pad))
        target_flat = jnp.pad(target_flat, (0, pad))
    rows = pred_flat.size // _LANE

    itemsize = jnp.dtype(pred.dtype).itemsize
    # Largest block fitting the per-input byte budget, aligned to the 512-row
    # compute chunk (also a multiple of the bf16/int8 sublane packing).
    max_rows = max(_CHUNK_ROWS,
                   (block_bytes // (_LANE * itemsize)) // _CHUNK_ROWS * _CHUNK_ROWS)
    tile_rows = rows if rows <= max_rows else max_rows
    n_tiles = pl.cdiv(rows, tile_rows)
    splits = num_splits if n_tiles >= num_splits else 1
    steps = pl.cdiv(n_tiles, splits)
    # Masking needed if the last tile is partial or a split has a clamped
    # (fully out-of-range, fully masked) trailing step.
    needs_mask = (rows % tile_rows != 0) or (splits * steps != n_tiles)

    pred2 = pred_flat.reshape(rows, _LANE)
    target2 = target_flat.reshape(rows, _LANE)

    def in_index_map(c, i):
        # Clamp so trailing (masked-out) steps never index past the array.
        return (jnp.minimum(c * steps + i, n_tiles - 1), 0)

    kernel = functools.partial(
        _rmse_kernel, rows=rows, tile_rows=tile_rows,
        chunk_rows=min(_CHUNK_ROWS, tile_rows),
        steps_per_split=steps, needs_mask=needs_mask)

    partials = pl.pallas_call(
        kernel,
        out_shape=jax.ShapeDtypeStruct((splits * _SUBLANE, _LANE), jnp.float32),
        grid_spec=pltpu.PrefetchScalarGridSpec(
            num_scalar_prefetch=0,
            grid=(splits, steps),
            in_specs=[
                pl.BlockSpec((tile_rows, _LANE), in_index_map),
                pl.BlockSpec((tile_rows, _LANE), in_index_map),
            ],
            out_specs=pl.BlockSpec((_SUBLANE, _LANE), lambda c, i: (c, 0)),
        ),
        compiler_params=pltpu.CompilerParams(
            # Split axis parallel (both TCs on v7x), reduction axis serial.
            dimension_semantics=("parallel", "arbitrary"),
            # 16 MiB pipeline footprint + ~2 MiB temps: safe on v7x's 64 MiB
            # physical VMEM; no need for a larger limit on v5e/v6e.
            vmem_limit_bytes=32 * 1024 * 1024,
        ),
    )(pred2, target2)

    # Final cross-lane/cross-split reduce, mean over the TRUE element count, sqrt.
    return jnp.sqrt(jnp.sum(partials) / total)


def _reference(pred, target):
    """Pure-JAX reference: sqrt(mean(square(|pred - target|)))."""
    return jnp.sqrt(jnp.mean(jnp.square(jnp.abs(pred - target))))


if __name__ == "__main__":
    key = jax.random.PRNGKey(0)
    k1, k2, k3, k4, k5, k6 = jax.random.split(key, 6)

    # Case 1: small (N, C, H, W); element count divisible by 1024 -> pad-free,
    # single-tile path.
    p1 = jax.random.normal(k1, (2, 4, 16, 16), dtype=jnp.float32)
    t1 = jax.random.normal(k2, (2, 4, 16, 16), dtype=jnp.float32)
    o1 = jax.block_until_ready(rmse_loss(p1, t1))
    r1 = jax.block_until_ready(_reference(p1, t1))
    assert jnp.allclose(o1, r1, rtol=1e-5, atol=1e-5), (o1, r1)

    # Case 2: ragged element count -> tiny zero-pad path, correct mean divisor.
    p2 = jax.random.normal(k3, (3, 5, 77), dtype=jnp.float32)
    t2 = jax.random.normal(k4, (3, 5, 77), dtype=jnp.float32)
    o2 = jax.block_until_ready(rmse_loss(p2, t2))
    r2 = jax.block_until_ready(_reference(p2, t2))
    assert jnp.allclose(o2, r2, rtol=1e-5, atol=1e-5), (o2, r2)

    # Case 3: small per-block budget to exercise the multi-tile grid, the
    # two-way split with per-split partial outputs, the in-kernel tail mask,
    # and a clamped fully-masked trailing step (rows=1032 -> 3 tiles of 512,
    # grid (2 splits x 2 steps)).
    p3 = jax.random.normal(k5, (1032, 128), dtype=jnp.float32)
    t3 = jax.random.normal(k6, (1032, 128), dtype=jnp.float32)
    o3 = jax.block_until_ready(
        rmse_loss(p3, t3, block_bytes=_CHUNK_ROWS * _LANE * 4))
    r3 = jax.block_until_ready(_reference(p3, t3))
    assert jnp.allclose(o3, r3, rtol=1e-5, atol=1e-5), (o3, r3)

    print("KERNEL_OK")
</pallas_src>

<mosaic_0001>
module attributes {stable_mosaic.version = 11 : i64} {
  func.func @_rmse_kernel(%arg0: i32, %arg1: i32, %arg2: memref<16x128xf32, #tpu.memory_space<vmem>>, %arg3: memref<16x128xf32, #tpu.memory_space<vmem>>, %arg4: memref<8x128xf32, #tpu.memory_space<vmem>>) attributes {dimension_semantics = [#tpu.dimension_semantics<parallel>, #tpu.dimension_semantics<arbitrary>], iteration_bounds = array<i64: 1, 1>, scalar_prefetch = 0 : i64, scratch_operands = 0 : i64, tpu.core_type = #tpu.core_type<tc>, window_params = [{transform_indices = @transform_0, window_bounds = array<i64: 16, 128>}, {transform_indices = @transform_1, window_bounds = array<i64: 16, 128>}, {transform_indices = @transform_2, window_bounds = array<i64: 8, 128>}]} {
    %c0_i32 = arith.constant 0 : i32
    %0 = arith.cmpi eq, %arg1, %c0_i32 : i32
    %1 = arith.extui %0 : i1 to i32
    %c0_i32_0 = arith.constant 0 : i32
    %2 = arith.cmpi ne, %1, %c0_i32_0 : i32
    scf.if %2 {
      %cst_8 = arith.constant 0.000000e+00 : f32
      %18 = vector.broadcast %cst_8 : f32 to vector<8x128xf32>
      %c0_9 = arith.constant 0 : index
      %c0_10 = arith.constant 0 : index
      %19 = vector.load %arg4[%c0_9, %c0_10] : memref<8x128xf32, #tpu.memory_space<vmem>>, vector<8x128xf32>
      tpu.vector_store %arg4[%c0_9, %c0_10], %18 {strides = array<i32>} : memref<8x128xf32, #tpu.memory_space<vmem>>, vector<8x128xf32>,
    } else {
    }
    %cst = arith.constant 0.000000e+00 : f32
    %3 = vector.broadcast %cst : f32 to vector<8x128xf32>
    %c0_i32_1 = arith.constant 0 : i32
    %c16_i32 = arith.constant 16 : i32
    %4 = arith.muli %c0_i32_1, %c16_i32 : i32
    %5 = tpu.assume_multiple %4, 16 : i32
    %6 = arith.index_cast %5 : i32 to index
    %c0 = arith.constant 0 : index
    %7 = vector.load %arg2[%6, %c0] : memref<16x128xf32, #tpu.memory_space<vmem>>, vector<16x128xf32>
    %8 = arith.index_cast %5 : i32 to index
    %c0_2 = arith.constant 0 : index
    %9 = vector.load %arg3[%8, %c0_2] : memref<16x128xf32, #tpu.memory_space<vmem>>, vector<16x128xf32>
    %10 = arith.subf %7, %9 : vector<16x128xf32>
    %11 = arith.mulf %10, %10 : vector<16x128xf32>
    %12 = vector.shape_cast %11 : vector<16x128xf32> to vector<2x8x128xf32>
    %cst_3 = arith.constant dense<0.000000e+00> : vector<8x128xf32>
    %13 = vector.multi_reduction <add>, %12, %cst_3 [0] : vector<2x8x128xf32> to vector<8x128xf32>
    %14 = arith.addf %3, %13 : vector<8x128xf32>
    %c1_i32 = arith.constant 1 : i32
    %c0_4 = arith.constant 0 : index
    %c0_5 = arith.constant 0 : index
    %15 = vector.load %arg4[%c0_4, %c0_5] : memref<8x128xf32, #tpu.memory_space<vmem>>, vector<8x128xf32>
    %16 = arith.addf %15, %14 : vector<8x128xf32>
    %c0_6 = arith.constant 0 : index
    %c0_7 = arith.constant 0 : index
    %17 = vector.load %arg4[%c0_6, %c0_7] : memref<8x128xf32, #tpu.memory_space<vmem>>, vector<8x128xf32>
    tpu.vector_store %arg4[%c0_6, %c0_7], %16 {strides = array<i32>} : memref<8x128xf32, #tpu.memory_space<vmem>>, vector<8x128xf32>,
    return
  }
  func.func @transform_0(%arg0: i32, %arg1: i32) -> (i32, i32) {
    %c1_i32 = arith.constant 1 : i32
    %0 = arith.muli %arg0, %c1_i32 : i32
    %1 = arith.addi %0, %arg1 : i32
    %c0_i32 = arith.constant 0 : i32
    %2 = arith.minsi %1, %c0_i32 : i32
    %c0_i32_0 = arith.constant 0 : i32
    %c0_i32_1 = arith.constant 0 : i32
    return %2, %c0_i32_0 : i32, i32
  }
  func.func @transform_1(%arg0: i32, %arg1: i32) -> (i32, i32) {
    %c1_i32 = arith.constant 1 : i32
    %0 = arith.muli %arg0, %c1_i32 : i32
    %1 = arith.addi %0, %arg1 : i32
    %c0_i32 = arith.constant 0 : i32
    %2 = arith.minsi %1, %c0_i32 : i32
    %c0_i32_0 = arith.constant 0 : i32
    %c0_i32_1 = arith.constant 0 : i32
    return %2, %c0_i32_0 : i32, i32
  }
  func.func @transform_2(%arg0: i32, %arg1: i32) -> (i32, i32) {
    %c0_i32 = arith.constant 0 : i32
    %c0_i32_0 = arith.constant 0 : i32
    return %arg0, %c0_i32 : i32, i32
  }
}

</mosaic_0001>

<bundles_post_ra>
// kernel: tpu_custom_call.1
= control target key start
LH: loop header
LB: loop body
LE: loop exit
PB: predicated region body
PF: predicated region fallthrough
CT: control target
= control target key end

     0   :  { %7 = vsyncpa [#allocation3], 0  ;;  %s217_s0 = inlined_call_operand.hbm [shape: f32[16,128], index: 0, kind: input, shape index: {}]   ;;  %s218_s1 = inlined_call_operand.hbm [shape: f32[16,128], index: 1, kind: input, shape index: {}]   ;;  %s219_s2 = inlined_call_operand.hbm [shape: f32[8,128], index: 2, kind: output, shape index: {}]  }
   0x1   :  { %8 = vsyncpa [#allocation6], 0 }
   0x2   :  { %9 = vsyncpa [#allocation4], 0  ;;  %s20_s11 = sshll.u32 %s217_s0, 4  ;;  %s188_s12 = smov [#allocation2]   ;;  %s21_s11 = int_to_ptr.hbm [resolvable:$true] %s20_s11 }
   0x3   :  { %s22_s13 = sshll.u32 %s188_s12, 4  ;;  %s39_s16 = sshll.u32 %s218_s1, 4  ;;  %s23_s13 = int_to_ptr.vmem [resolvable:$true] %s22_s13  ;;  %s40_s16 = int_to_ptr.hbm [resolvable:$true] %s39_s16 }
   0x4   :  { %s189_s17 = smov 128   ;;  %s190_s18 = smov 8  }
   0x5   :  { %28 = dma.hbm_to_vmem [thread:$0]  %s21_s11, 256, %s23_s13, [#allocation3], %s189_s17, %s189_s17, %s190_s18  }
   0x6   :  { %s191_s19 = smov [#allocation5]  }
   0x7   :  { %s41_s20 = sshll.u32 %s191_s19, 4  ;;  %s42_s20 = int_to_ptr.vmem [resolvable:$true] %s41_s20 }
   0x8   :  { %47 = dma.hbm_to_vmem [thread:$0]  %s40_s16, 256, %s42_s20, [#allocation6], %s189_s17, %s189_s17, %s190_s18  }
   0x9   :  { %182 = dma.done.wait [#allocation3], 256  }
   0xa   :  { %183 = vsyncadd [#allocation3], 4294967040 }
   0xb   :  { %184 = dma.done.wait [#allocation6], 256  }
   0xc   :  { %185 = vsyncadd [#allocation6], 4294967040  ;;  %v69_v0 = vld [vmem:[#allocation2] sm:$0xff]  ;;  %v70_v1 = vld [vmem:[#allocation2 + $0x8] sm:$0xff]  ;;  %s192_s0 = smov [#allocation7]   ;;  %s89_s23 = sshll.u32 %s219_s2, 4  ;;  %s90_s23 = int_to_ptr.hbm [resolvable:$true] %s89_s23 }
   0xd   :  { %v71_v2 = vld [vmem:[#allocation5] sm:$0xff]  ;;  %v72_v3 = vld [vmem:[#allocation5 + $0x8] sm:$0xff]  ;;  %s87_s1 = sshll.u32 %s192_s0, 4  ;;  %s88_s1 = int_to_ptr.vmem [resolvable:$true] %s87_s1 }
   0xe   :  { %v73_v4 = vsub.f32 %v69_v0, %v71_v2  ;;  %v74_v5 = vsub.f32 %v70_v1, %v72_v3 }
  0x10   :  { %v75_v6 = vmul.f32 %v73_v4, %v73_v4  ;;  %v76_v7 = vmul.f32 %v74_v5, %v74_v5 }
  0x12   :  { %v77_v8 = vadd.f32 %v76_v7, %v75_v6 }
  0x14   :  { %81 = vst [vmem:[#allocation7] sm:$0xff] %v77_v8 }
  0x15   :  { %92 = dma.vmem_to_hbm [thread:$0]  %s88_s1, 128, %s90_s23, [#allocation4]  }
  0x16   :  { %186 = dma.done.wait [#allocation4], 128  }
  0x17   :  { %187 = vsyncadd [#allocation4], 4294967168 }
  0x18   :  { %97 = vsyncpa [#allocation3], 1 }
  0x19   :  { %98 = vsyncpa [#allocation6], 1 }
  0x1a   :  { %99 = vsyncpa [#allocation4], 1 }

</bundles_post_ra>
